<compile_context>
chip_gen: v7x
topology: tpu7x:2x2x1
jax: 0.10.0
libtpu: 0.0.40
codegen_flags: <defaults>
</compile_context>

<pallas_src>
import functools

import jax
import jax.numpy as jnp
from jax.experimental import pallas as pl
from jax.experimental.pallas import tpu as pltpu

IN_FEATURES = 24          # getCurrentState() -> 24-dim state
IN_PAD = 32               # zero-padded contraction dim (dense bf16 tiles)
HIDDEN = 512
OUT_FEATURES = 21         # action-space size (getAvailableActions -> 21)
OUT_PADDED = 128          # lane-dense output slab; sliced back to 21 in wrapper

# v5e MXU is 128 rows, v6e/v7x are 256 rows -> pick the batch tile accordingly.
_DEVICE_KIND = jax.devices()[0].device_kind.lower()
_TM_MAX = 128 if "v5" in _DEVICE_KIND else 256


def _dqn_mlp_kernel(x_ref, w1_ref, w23_ref, b_ref, o_ref):
    # x_ref:   (TM, 32)        bf16
    # w1_ref:  (32, 512)       bf16   (rows 24..31 are zero)
    # w23_ref: (512, 640)      bf16   ([:, :512] = w2, [:, 512:] = w3 padded)
    # b_ref:   (3, 512)        f32    (row0 = b1, row1 = b2, row2[:128] = b3p)
    # o_ref:   (TM, 128)       f32
    x = x_ref[...]
    b1 = b_ref[0:1, :]                               # (1, 512)
    b2 = b_ref[1:2, :]                               # (1, 512)
    b3 = b_ref[2:3, :OUT_PADDED]                     # (1, 128)

    h1 = jnp.dot(x, w1_ref[...], preferred_element_type=jnp.float32)
    h1 = jnp.maximum(h1 + b1, 0.0)                   # relu(fc1); dropout == id
    h2 = jnp.dot(h1.astype(jnp.bfloat16), w23_ref[:, :HIDDEN],
                 preferred_element_type=jnp.float32)
    h2 = jnp.maximum(h2 + b2, 0.0)                   # relu(fc2); dropout == id
    o = jnp.dot(h2.astype(jnp.bfloat16), w23_ref[:, HIDDEN:],
                preferred_element_type=jnp.float32)  # (TM, 128)
    o_ref[...] = o + b3


@jax.jit
def _pallas_mlp(x, w1, w23, biases):
    B = x.shape[0]
    # bf16 LHS packs 2 rows per sublane -> pad batch to a multiple of 16.
    b_pad = max(16, ((B + 15) // 16) * 16)
    tm = min(_TM_MAX, b_pad)
    b_pad = ((b_pad + tm - 1) // tm) * tm            # grid divides evenly
    grid = (b_pad // tm,)

    # single cheap wrapper op: pad batch rows + feature cols, cast to bf16
    x = jnp.pad(x, ((0, b_pad - B), (0, IN_PAD - IN_FEATURES))).astype(jnp.bfloat16)

    flops = 2 * b_pad * (IN_PAD * HIDDEN + HIDDEN * HIDDEN + HIDDEN * OUT_PADDED)
    bytes_accessed = (x.size * 2 + w1.size * 2 + w23.size * 2
                      + biases.size * 4 + b_pad * OUT_PADDED * 4)

    out = pl.pallas_call(
        _dqn_mlp_kernel,
        out_shape=jax.ShapeDtypeStruct((b_pad, OUT_PADDED), jnp.float32),
        grid_spec=pltpu.PrefetchScalarGridSpec(
            num_scalar_prefetch=0,
            grid=grid,
            in_specs=[
                pl.BlockSpec((tm, IN_PAD), lambda i: (i, 0)),
                pl.BlockSpec((IN_PAD, HIDDEN), lambda i: (0, 0)),          # resident
                pl.BlockSpec((HIDDEN, HIDDEN + OUT_PADDED), lambda i: (0, 0)),
                pl.BlockSpec((3, HIDDEN), lambda i: (0, 0)),
            ],
            out_specs=pl.BlockSpec((tm, OUT_PADDED), lambda i: (i, 0)),
        ),
        compiler_params=pltpu.CompilerParams(
            dimension_semantics=("parallel",),       # megacore on v7x
            vmem_limit_bytes=16 * 1024 * 1024,
        ),
        cost_estimate=pl.CostEstimate(
            flops=flops, transcendentals=0, bytes_accessed=bytes_accessed),
    )(x, w1, w23, biases)
    return out[:B, :OUT_FEATURES]


def init_dqn_params(key):
    """Deterministic init mimicking nn.Linear's uniform(-1/sqrt(fan_in), ...).

    Weights are stored TRANSPOSED relative to PyTorch nn.Linear, i.e.
    (in_features, out_features), so the kernel computes x @ W + b directly.
    Packing: w1 is (32, 512) bf16 with zero rows 24..31; w2|w3p form one
    (512, 640) bf16 slab; b1/b2/b3p form one (3, 512) f32 slab.
    """
    def linear(key, fan_in, fan_out):
        kw, kb = jax.random.split(key)
        bound = 1.0 / jnp.sqrt(jnp.float32(fan_in))
        w = jax.random.uniform(kw, (fan_in, fan_out), jnp.float32, -bound, bound)
        b = jax.random.uniform(kb, (fan_out,), jnp.float32, -bound, bound)
        return w, b

    k1, k2, k3 = jax.random.split(key, 3)
    w1, b1 = linear(k1, IN_FEATURES, HIDDEN)
    w2, b2 = linear(k2, HIDDEN, HIDDEN)
    w3, b3 = linear(k3, HIDDEN, OUT_FEATURES)

    w1p = jnp.zeros((IN_PAD, HIDDEN), jnp.float32).at[:IN_FEATURES, :].set(w1)
    w3p = jnp.zeros((HIDDEN, OUT_PADDED), jnp.float32).at[:, :OUT_FEATURES].set(w3)
    w23 = jnp.concatenate([w2, w3p], axis=1).astype(jnp.bfloat16)   # (512, 640)

    biases = jnp.zeros((3, HIDDEN), jnp.float32)
    biases = biases.at[0, :].set(b1)
    biases = biases.at[1, :].set(b2)
    biases = biases.at[2, :OUT_FEATURES].set(b3)

    return dict(w1=w1p.astype(jnp.bfloat16), w23=w23, biases=biases)


def dqn_forward(params, state):
    """Mirrors DQN.forward semantics (inference)."""
    if state is None or state.size == 0:
        return jnp.zeros((OUT_FEATURES,), jnp.float32)   # torch.zeros(21)
    if state.ndim == 1:
        state = state[None, :]
    x = _pallas_mlp(state.astype(jnp.float32),
                    params["w1"], params["w23"], params["biases"])
    # PyTorch forward: `if x.shape[0] == 1: x = x.squeeze(0)`
    if x.shape[0] == 1:
        x = jnp.squeeze(x, axis=0)
    return x


def _reference_mlp(params, x):
    """Pure-JAX f32 reference using the same (bf16-stored) weights."""
    w1 = params["w1"].astype(jnp.float32)[:IN_FEATURES, :]
    w2 = params["w23"][:, :HIDDEN].astype(jnp.float32)
    w3 = params["w23"][:, HIDDEN:HIDDEN + OUT_FEATURES].astype(jnp.float32)
    b1 = params["biases"][0]
    b2 = params["biases"][1]
    b3 = params["biases"][2, :OUT_FEATURES]
    h1 = jnp.maximum(x @ w1 + b1, 0.0)
    h2 = jnp.maximum(h1 @ w2 + b2, 0.0)
    return h2 @ w3 + b3


if __name__ == "__main__":
    key = jax.random.PRNGKey(0)
    kp, kx = jax.random.split(key)
    params = init_dqn_params(kp)

    # small batch of states, each 24-dim as produced by getCurrentState()
    batch = 2
    states = jax.random.uniform(kx, (batch, IN_FEATURES), jnp.float32)

    q_values = dqn_forward(params, states)
    jax.block_until_ready(q_values)
    assert q_values.shape == (batch, OUT_FEATURES)
    assert bool(jnp.all(jnp.isfinite(q_values)))

    # accuracy vs pure-JAX reference (only bf16 activation rounding differs)
    ref = _reference_mlp(params, states)
    assert float(jnp.max(jnp.abs(q_values - ref))) < 5e-2

    # single-state (1-D input) path: output is squeezed to (21,), like PyTorch
    q_single = dqn_forward(params, states[0])
    jax.block_until_ready(q_single)
    assert q_single.shape == (OUT_FEATURES,)

    # empty-state early return, like PyTorch
    q_empty = dqn_forward(params, jnp.zeros((0,), jnp.float32))
    assert q_empty.shape == (OUT_FEATURES,)

    # batched (replay-buffer-style) path exercising the multi-tile batch grid
    big = jax.random.uniform(jax.random.PRNGKey(1), (300, IN_FEATURES), jnp.float32)
    q_big = dqn_forward(params, big)
    jax.block_until_ready(q_big)
    assert q_big.shape == (300, OUT_FEATURES)
    assert bool(jnp.all(jnp.isfinite(q_big)))

    print("KERNEL_OK")
</pallas_src>

<mosaic_0001>
module attributes {stable_mosaic.version = 11 : i64} {
  func.func @_dqn_mlp_kernel(%arg0: i32, %arg1: memref<16x32xbf16, #tpu.memory_space<vmem>>, %arg2: memref<32x512xbf16, #tpu.memory_space<vmem>>, %arg3: memref<512x640xbf16, #tpu.memory_space<vmem>>, %arg4: memref<3x512xf32, #tpu.memory_space<vmem>>, %arg5: memref<16x128xf32, #tpu.memory_space<vmem>>) attributes {dimension_semantics = [#tpu.dimension_semantics<parallel>], iteration_bounds = array<i64: 1>, scalar_prefetch = 0 : i64, scratch_operands = 0 : i64, tpu.core_type = #tpu.core_type<tc>, window_params = [{transform_indices = @transform_0, window_bounds = array<i64: 16, 32>}, {pipeline_mode = #tpu.pipeline_mode<synchronous>, transform_indices = @transform_1, window_bounds = array<i64: 32, 512>}, {pipeline_mode = #tpu.pipeline_mode<synchronous>, transform_indices = @transform_2, window_bounds = array<i64: 512, 640>}, {pipeline_mode = #tpu.pipeline_mode<synchronous>, transform_indices = @transform_3, window_bounds = array<i64: 3, 512>}, {transform_indices = @transform_4, window_bounds = array<i64: 16, 128>}]} {
    %c0 = arith.constant 0 : index
    %c0_0 = arith.constant 0 : index
    %0 = vector.load %arg1[%c0, %c0_0] : memref<16x32xbf16, #tpu.memory_space<vmem>>, vector<16x32xbf16>
    %c0_1 = arith.constant 0 : index
    %c0_2 = arith.constant 0 : index
    %1 = vector.load %arg4[%c0_1, %c0_2] : memref<3x512xf32, #tpu.memory_space<vmem>>, vector<1x512xf32>
    %c1 = arith.constant 1 : index
    %c0_3 = arith.constant 0 : index
    %2 = vector.load %arg4[%c1, %c0_3] : memref<3x512xf32, #tpu.memory_space<vmem>>, vector<1x512xf32>
    %c2 = arith.constant 2 : index
    %c0_4 = arith.constant 0 : index
    %3 = vector.load %arg4[%c2, %c0_4] : memref<3x512xf32, #tpu.memory_space<vmem>>, vector<1x128xf32>
    %c0_5 = arith.constant 0 : index
    %c0_6 = arith.constant 0 : index
    %4 = vector.load %arg2[%c0_5, %c0_6] : memref<32x512xbf16, #tpu.memory_space<vmem>>, vector<32x512xbf16>
    %cst = arith.constant dense<0.000000e+00> : vector<16x512xf32>
    %5 = tpu.matmul %0, %4, %cst {dimension_numbers = #tpu.dot_dimension_numbers<[1], [0], [0], [1], [0, 0, 1, 1], [], []>} : vector<16x32xbf16>, vector<32x512xbf16>, vector<16x512xf32> -> vector<16x512xf32>
    %6 = vector.broadcast %1 : vector<1x512xf32> to vector<16x512xf32>
    %7 = arith.addf %5, %6 : vector<16x512xf32>
    %cst_7 = arith.constant 0.000000e+00 : f32
    %8 = vector.broadcast %cst_7 : f32 to vector<16x512xf32>
    %9 = arith.maximumf %7, %8 : vector<16x512xf32>
    %10 = arith.truncf %9 : vector<16x512xf32> to vector<16x512xbf16>
    %c0_8 = arith.constant 0 : index
    %c0_9 = arith.constant 0 : index
    %11 = vector.load %arg3[%c0_8, %c0_9] : memref<512x640xbf16, #tpu.memory_space<vmem>>, vector<512x512xbf16>
    %cst_10 = arith.constant dense<0.000000e+00> : vector<16x512xf32>
    %12 = tpu.matmul %10, %11, %cst_10 {dimension_numbers = #tpu.dot_dimension_numbers<[1], [0], [0], [1], [0, 0, 1, 1], [], []>} : vector<16x512xbf16>, vector<512x512xbf16>, vector<16x512xf32> -> vector<16x512xf32>
    %13 = vector.broadcast %2 : vector<1x512xf32> to vector<16x512xf32>
    %14 = arith.addf %12, %13 : vector<16x512xf32>
    %cst_11 = arith.constant 0.000000e+00 : f32
    %15 = vector.broadcast %cst_11 : f32 to vector<16x512xf32>
    %16 = arith.maximumf %14, %15 : vector<16x512xf32>
    %17 = arith.truncf %16 : vector<16x512xf32> to vector<16x512xbf16>
    %c0_12 = arith.constant 0 : index
    %c512 = arith.constant 512 : index
    %18 = vector.load %arg3[%c0_12, %c512] : memref<512x640xbf16, #tpu.memory_space<vmem>>, vector<512x128xbf16>
    %cst_13 = arith.constant dense<0.000000e+00> : vector<16x128xf32>
    %19 = tpu.matmul %17, %18, %cst_13 {dimension_numbers = #tpu.dot_dimension_numbers<[1], [0], [0], [1], [0, 0, 1, 1], [], []>} : vector<16x512xbf16>, vector<512x128xbf16>, vector<16x128xf32> -> vector<16x128xf32>
    %20 = vector.broadcast %3 : vector<1x128xf32> to vector<16x128xf32>
    %21 = arith.addf %19, %20 : vector<16x128xf32>
    %c0_14 = arith.constant 0 : index
    %c0_15 = arith.constant 0 : index
    %22 = vector.load %arg5[%c0_14, %c0_15] : memref<16x128xf32, #tpu.memory_space<vmem>>, vector<16x128xf32>
    tpu.vector_store %arg5[%c0_14, %c0_15], %21 {strides = array<i32>} : memref<16x128xf32, #tpu.memory_space<vmem>>, vector<16x128xf32>,
    return
  }
  func.func @transform_0(%arg0: i32) -> (i32, i32) {
    %c0_i32 = arith.constant 0 : i32
    %c0_i32_0 = arith.constant 0 : i32
    return %arg0, %c0_i32 : i32, i32
  }
  func.func @transform_1(%arg0: i32) -> (i32, i32) {
    %c0_i32 = arith.constant 0 : i32
    %c0_i32_0 = arith.constant 0 : i32
    %c0_i32_1 = arith.constant 0 : i32
    return %c0_i32, %c0_i32_0 : i32, i32
  }
  func.func @transform_2(%arg0: i32) -> (i32, i32) {
    %c0_i32 = arith.constant 0 : i32
    %c0_i32_0 = arith.constant 0 : i32
    %c0_i32_1 = arith.constant 0 : i32
    return %c0_i32, %c0_i32_0 : i32, i32
  }
  func.func @transform_3(%arg0: i32) -> (i32, i32) {
    %c0_i32 = arith.constant 0 : i32
    %c0_i32_0 = arith.constant 0 : i32
    %c0_i32_1 = arith.constant 0 : i32
    return %c0_i32, %c0_i32_0 : i32, i32
  }
  func.func @transform_4(%arg0: i32) -> (i32, i32) {
    %c0_i32 = arith.constant 0 : i32
    %c0_i32_0 = arith.constant 0 : i32
    return %arg0, %c0_i32 : i32, i32
  }
}

</mosaic_0001>

<bundles_post_ra>
// kernel: _pallas_mlp.1
= control target key start
LH: loop header
LB: loop body
LE: loop exit
PB: predicated region body
PF: predicated region fallthrough
CT: control target
= control target key end

     0   :  { %9 = vsyncpa [#allocation3], 0  ;;  %s2178_s0 = inlined_call_operand.vmem [shape: bf16[16,32], index: 0, kind: input, shape index: {}]   ;;  %s2179_s1 = inlined_call_operand.hbm [shape: bf16[32,512], index: 1, kind: input, shape index: {}]   ;;  %s2180_s2 = inlined_call_operand.hbm [shape: bf16[512,640], index: 2, kind: input, shape index: {}]   ;;  %s2181_s3 = inlined_call_operand.vmem [shape: f32[3,512], index: 3, kind: input, shape index: {}]   ;;  %s2182_s4 = inlined_call_operand.vmem [shape: f32[16,128], index: 4, kind: output, shape index: {}]  }
   0x1   :  { %10 = vsyncpa [#allocation5], 0  ;;  %s2076_s15 = smov [#allocation2]   ;;  %s2028_s19 = scalar_lea.hbm %s2179_s1, 1024 }
   0x2   :  { %s18_s16 = sshll.u32 %s2076_s15, 4  ;;  %p2029_p0 = scmp.ne.s32.totalorder %s2179_s1, %s2028_s19  ;;  %s19_s16 = int_to_ptr.vmem [resolvable:$true] %s18_s16 }
   0x3   :  { %p2032_p1 = scmp.lt.u32.totalorder %s2028_s19, %s2179_s1 }
   0x5   :  { %p2034_p2 = pnand %p2032_p1, %p2029_p0 }
   0x7   :  { %2037 = shalt.err (!%p2034_p2)
}
   0x8   :  { %s2038_s24 = scalar_lea.vmem %s19_s16, 1024  ;;  %p2043_p4 = scmp.lt.s32.totalorder %s19_s16, %s19_s16 }
   0x9   :  { %p2039_p3 = scmp.ne.s32.totalorder %s19_s16, %s2038_s24  ;;  %p2044_p5 = scmp.lt.s32.totalorder %s2038_s24, %s2038_s24 }
   0xb   :  { %p2045_p6 = por %p2044_p5, %p2043_p4 }
   0xd   :  { %p2046_p7 = pnand %p2045_p6, %p2039_p3 }
   0xf   :  { %2049 = shalt.err (!%p2046_p7)
}
  0x10   :  { %s2077_s25 = smov 256   ;;  %s2078_s26 = smov 16  }
  0x11   :  { %24 = dma.hbm_to_vmem [thread:$0]  %s2179_s1, 1024, %s19_s16, [#allocation3], %s2077_s25, %s2077_s25, %s2078_s26  }
  0x12   :  { %s2079_s29 = smov [#allocation4]   ;;  %s2050_s7 = scalar_lea.hbm %s2180_s2, 20480 }
  0x13   :  { %s30_s30 = sshll.u32 %s2079_s29, 4  ;;  %p2051_p8 = scmp.ne.s32.totalorder %s2180_s2, %s2050_s7  ;;  %s31_s30 = int_to_ptr.vmem [resolvable:$true] %s30_s30 }
  0x14   :  { %p2054_p9 = scmp.lt.u32.totalorder %s2050_s7, %s2180_s2 }
  0x16   :  { %p2056_p10 = pnand %p2054_p9, %p2051_p8 }
  0x18   :  { %2059 = shalt.err (!%p2056_p10)
}
  0x19   :  { %s2060_s12 = scalar_lea.vmem %s31_s30, 20480  ;;  %p2065_p12 = scmp.lt.s32.totalorder %s31_s30, %s31_s30 }
  0x1a   :  { %p2061_p11 = scmp.ne.s32.totalorder %s31_s30, %s2060_s12  ;;  %p2066_p13 = scmp.lt.s32.totalorder %s2060_s12, %s2060_s12 }
  0x1c   :  { %p2067_p0 = por %p2066_p13, %p2065_p12 }
  0x1e   :  { %p2068_p1 = pnand %p2067_p0, %p2061_p11 }
  0x20   :  { %2071 = shalt.err (!%p2068_p1)
}
  0x21   :  { %s2080_s1 = smov 320   ;;  %s2081_s13 = smov 20  }
  0x22   :  { %36 = dma.hbm_to_vmem [thread:$0]  %s2180_s2, 20480, %s31_s30, [#allocation5], %s2080_s1, %s2080_s1, %s2081_s13  }
  0x23   :  { %2072 = dma.done.wait [#allocation3], 1024  }
  0x24   :  { %2073 = vsyncadd [#allocation3], 4294966272 }
  0x25   :  { %2074 = dma.done.wait [#allocation5], 20480  }
  0x26   :  { %2075 = vsyncadd [#allocation5], 4294946816  ;;  %v2082_v0 = vmov 0   ;;  %v1791_v1 = vld [vmem:[#allocation2 + $0x4] ss:$16 sps:$4 sm:$0xff]   ;;  %vm126_vm0 = vcmask 261120  }
  0x27   :  { %162 = vmatprep.mubr.bf16.mxu0 %v2082_v0  ;;  %205 = vmatprep.mubr.bf16.mxu1 %v2082_v0  ;;  %v1793_v2 = vld [vmem:[#allocation2] ss:$16 sps:$4 sm:$0xff]   ;;  %v1794_v3 = vld [vmem:[#allocation2 + $0x24] ss:$16 sps:$4 sm:$0xff]   ;;  %v1798_v6 = vld [vmem:[#allocation2 + $0xc] ss:$16 sps:$4 sm:$0xff]  }
  0x28   :  { %130 = vmatprep.subr.bf16.mxu0 %v1791_v1  ;;  %v1796_v4 = vld [vmem:[#allocation2 + $0x20] ss:$16 sps:$4 sm:$0xff]   ;;  %v1800_v7 = vld [vmem:[#allocation2 + $0x8] ss:$16 sps:$4 sm:$0xff]   ;;  %v1801_v8 = vld [vmem:[#allocation2 + $0x2c] ss:$16 sps:$4 sm:$0xff]   ;;  %173 = vmatprep.subr.bf16.mxu1 %v1798_v6 }
  0x29   :  { %131 = vmatpush1.bf16.msra.mxu0 %v1793_v2  ;;  %v1797_v5 = vld [vmem:[%s2178_s0] sm:$0xff]   ;;  %v1803_v9 = vld [vmem:[#allocation2 + $0x28] ss:$16 sps:$4 sm:$0xff]   ;;  %174 = vmatpush1.bf16.msra.mxu1 %v1800_v7  ;;  %v1809_v12 = vld [vmem:[#allocation4 + $0xc] ss:$20 sps:$4 sm:$0xff]  }
  0x2a   :  { %132 = vmatprep.subr.bf16.mxu0 %v1794_v3  ;;  %v1804_v10 = vld [vmem:[#allocation4] ss:$20 sps:$4 sm:$0xff]   ;;  %v1806_v11 = vld [vmem:[#allocation4 + $0x4] ss:$20 sps:$4 sm:$0xff]   ;;  %175 = vmatprep.subr.bf16.mxu1 %v1801_v8  ;;  %v1807_v14 = vld [vmem:[#allocation4 + $0x8] ss:$20 sps:$4 sm:$0xff]  }
  0x2b   :  { %v1812_v13 = vld [vmem:[#allocation4 + $0x2c] ss:$20 sps:$4 sm:$0xff]   ;;  %v1810_v15 = vld [vmem:[#allocation4 + $0x28] ss:$20 sps:$4 sm:$0xff]   ;;  %v1813_v18 = vld [vmem:[#allocation4 + $0x30] ss:$20 sps:$4 sm:$0xff]  }
  0x2c   :  { %v1815_v16 = vld [vmem:[#allocation4 + $0x34] ss:$20 sps:$4 sm:$0xff]   ;;  %v1816_v19 = vld [vmem:[#allocation4 + $0x50] ss:$20 sps:$4 sm:$0xff]   ;;  %v1819_v22 = vld [vmem:[#allocation4 + $0x58] ss:$20 sps:$4 sm:$0xff]  }
  0x2d   :  { %133 = vmatpush1.bf16.msra.mxu0 %v1796_v4  ;;  %176 = vmatpush1.bf16.msra.mxu1 %v1803_v9  ;;  %v1818_v17 = vld [vmem:[#allocation4 + $0x54] ss:$20 sps:$4 sm:$0xff]   ;;  %v1821_v20 = vld [vmem:[#allocation4 + $0x5c] ss:$20 sps:$4 sm:$0xff]   ;;  %v1822_v23 = vld [vmem:[#allocation4 + $0x78] ss:$20 sps:$4 sm:$0xff]  }
  0x2e   :  { %1017 = vmatprep.subr.bf16.mxu0 %v1806_v11  ;;  %1103 = vmatprep.subr.bf16.mxu1 %v1809_v12  ;;  %v1824_v21 = vld [vmem:[#allocation4 + $0x7c] ss:$20 sps:$4 sm:$0xff]   ;;  %v1827_v24 = vld [vmem:[#allocation4 + $0x84] ss:$20 sps:$4 sm:$0xff]   ;;  %v1825_v26 = vld [vmem:[#allocation4 + $0x80] ss:$20 sps:$4 sm:$0xff]   ;;  %v61_v12 = vlaneseq }
  0x2f   :  { %v1830_v25 = vld [vmem:[#allocation4 + $0xa4] ss:$20 sps:$4 sm:$0xff]   ;;  %v1828_v27 = vld [vmem:[#allocation4 + $0xa0] ss:$20 sps:$4 sm:$0xff]   ;;  %v1831_v30 = vld [vmem:[#allocation4 + $0xa8] ss:$20 sps:$4 sm:$0xff]  }
  0x30   :  { %1561 = vmatmul.mubr.msk.bf16.vlgmr.msra.gmra.mrb[0].mxu0 %vm126_vm0, %v1797_v5  ;;  %1562 = vmatmul.mubr.msk.bf16.vlgmr.msra.gmra.mrb[0].mxu1 %vm126_vm0, %v1797_v5  ;;  %v1833_v28 = vld [vmem:[#allocation4 + $0xac] ss:$20 sps:$4 sm:$0xff]   ;;  %v1834_v31 = vld [vmem:[#allocation4 + $0xc8] ss:$20 sps:$4 sm:$0xff]   ;;  %v1837_v34 = vld [vmem:[#allocation4 + $0xd0] ss:$20 sps:$4 sm:$0xff]  }
  0x31   :  { %1018 = vmatpush1.bf16.msra.mxu0 %v1804_v10  ;;  %1104 = vmatpush1.bf16.msra.mxu1 %v1807_v14  ;;  %v1836_v29 = vld [vmem:[#allocation4 + $0xcc] ss:$20 sps:$4 sm:$0xff]   ;;  %v1839_v32 = vld [vmem:[#allocation4 + $0xd4] ss:$20 sps:$4 sm:$0xff]   ;;  %v1840_v35 = vld [vmem:[#allocation4 + $0xf0] ss:$20 sps:$4 sm:$0xff]  }
  0x32   :  { %1019 = vmatprep.subr.bf16.mxu0 %v1812_v13  ;;  %1105 = vmatprep.subr.bf16.mxu1 %v1815_v16  ;;  %v1842_v33 = vld [vmem:[#allocation4 + $0xf4] ss:$20 sps:$4 sm:$0xff]   ;;  %v1845_v36 = vld [vmem:[#allocation4 + $0xfc] ss:$20 sps:$4 sm:$0xff]   ;;  %v1843_v38 = vld [vmem:[#allocation4 + $0xf8] ss:$20 sps:$4 sm:$0xff]  }
  0x33   :  { %v1848_v37 = vld [vmem:[#allocation4 + $0x11c] ss:$20 sps:$4 sm:$0xff]   ;;  %v1846_v39 = vld [vmem:[#allocation4 + $0x118] ss:$20 sps:$4 sm:$0xff]   ;;  %v1849_v42 = vld [vmem:[#allocation4 + $0x120] ss:$20 sps:$4 sm:$0xff]  }
  0x34   :  { %v1851_v40 = vld [vmem:[#allocation4 + $0x124] ss:$20 sps:$4 sm:$0xff]   ;;  %v1852_v43 = vld [vmem:[#allocation4 + $0x140] ss:$20 sps:$4 sm:$0xff]   ;;  %v1855_v46 = vld [vmem:[#allocation4 + $0x148] ss:$20 sps:$4 sm:$0xff]  }
  0x35   :  { %1020 = vmatpush1.bf16.msra.mxu0 %v1810_v15  ;;  %1106 = vmatpush1.bf16.msra.mxu1 %v1813_v18  ;;  %v1854_v41 = vld [vmem:[#allocation4 + $0x144] ss:$20 sps:$4 sm:$0xff]   ;;  %v1857_v44 = vld [vmem:[#allocation4 + $0x14c] ss:$20 sps:$4 sm:$0xff]   ;;  %v1858_v47 = vld [vmem:[#allocation4 + $0x168] ss:$20 sps:$4 sm:$0xff]  }
  0x36   :  { %1021 = vmatprep.subr.bf16.mxu0 %v1818_v17  ;;  %1107 = vmatprep.subr.bf16.mxu1 %v1821_v20  ;;  %v1860_v45 = vld [vmem:[#allocation4 + $0x16c] ss:$20 sps:$4 sm:$0xff]   ;;  %v1863_v48 = vld [vmem:[#allocation4 + $0x174] ss:$20 sps:$4 sm:$0xff]   ;;  %v1861_v50 = vld [vmem:[#allocation4 + $0x170] ss:$20 sps:$4 sm:$0xff]  }
  0x37   :  { %v1866_v49 = vld [vmem:[#allocation4 + $0x194] ss:$20 sps:$4 sm:$0xff]   ;;  %v1864_v51 = vld [vmem:[#allocation4 + $0x190] ss:$20 sps:$4 sm:$0xff]   ;;  %v1867_v54 = vld [vmem:[#allocation4 + $0x198] ss:$20 sps:$4 sm:$0xff]  }
  0x38   :  { %v1869_v52 = vld [vmem:[#allocation4 + $0x19c] ss:$20 sps:$4 sm:$0xff]   ;;  %v1870_v55 = vld [vmem:[#allocation4 + $0x1b8] ss:$20 sps:$4 sm:$0xff]   ;;  %v1873_v58 = vld [vmem:[#allocation4 + $0x1c0] ss:$20 sps:$4 sm:$0xff]  }
  0x39   :  { %1022 = vmatpush1.bf16.msra.mxu0 %v1816_v19  ;;  %1108 = vmatpush1.bf16.msra.mxu1 %v1819_v22  ;;  %v1872_v53 = vld [vmem:[#allocation4 + $0x1bc] ss:$20 sps:$4 sm:$0xff]   ;;  %v1875_v56 = vld [vmem:[#allocation4 + $0x1c4] ss:$20 sps:$4 sm:$0xff]   ;;  %v1876_v59 = vld [vmem:[#allocation4 + $0x1e0] ss:$20 sps:$4 sm:$0xff]  }
  0x3a   :  { %1023 = vmatprep.subr.bf16.mxu0 %v1824_v21  ;;  %1109 = vmatprep.subr.bf16.mxu1 %v1827_v24  ;;  %v1878_v57 = vld [vmem:[#allocation4 + $0x1e4] ss:$20 sps:$4 sm:$0xff]   ;;  %v1881_v60 = vld [vmem:[#allocation4 + $0x1ec] ss:$20 sps:$4 sm:$0xff]   ;;  %v1879_v62 = vld [vmem:[#allocation4 + $0x1e8] ss:$20 sps:$4 sm:$0xff]  }
  0x3b   :  { %v1884_v61 = vld [vmem:[#allocation4 + $0x20c] ss:$20 sps:$4 sm:$0xff]   ;;  %v1882_v63 = vld [vmem:[#allocation4 + $0x208] ss:$20 sps:$4 sm:$0xff]   ;;  %v1885_v1 = vld [vmem:[#allocation4 + $0x210] ss:$20 sps:$4 sm:$0xff]  }
  0x3c   :  { %v1887_v0 = vld [vmem:[#allocation4 + $0x214] ss:$20 sps:$4 sm:$0xff]   ;;  %v1893_v3 = vld [vmem:[#allocation4 + $0x23c] ss:$20 sps:$4 sm:$0xff]   ;;  %v1891_v5 = vld [vmem:[#allocation4 + $0x238] ss:$20 sps:$4 sm:$0xff]  }
  0x3d   :  { %1024 = vmatpush1.bf16.msra.mxu0 %v1822_v23  ;;  %1110 = vmatpush1.bf16.msra.mxu1 %v1825_v26  ;;  %v1890_v2 = vld [vmem:[#allocation4 + $0x234] ss:$20 sps:$4 sm:$0xff]   ;;  %v1888_v4 = vld [vmem:[#allocation4 + $0x230] ss:$20 sps:$4 sm:$0xff]   ;;  %v1894_v8 = vld [vmem:[#allocation4 + $0x258] ss:$20 sps:$4 sm:$0xff]  }
  0x3e   :  { %1025 = vmatprep.subr.bf16.mxu0 %v1830_v25  ;;  %1111 = vmatprep.subr.bf16.mxu1 %v1833_v28  ;;  %v1896_v6 = vld [vmem:[#allocation4 + $0x25c] ss:$20 sps:$4 sm:$0xff]   ;;  %v1899_v7 = vld [vmem:[#allocation4 + $0x264] ss:$20 sps:$4 sm:$0xff]   ;;  %v1897_v9 = vld [vmem:[#allocation4 + $0x260] ss:$20 sps:$4 sm:$0xff]  }
  0x3f   :  { %v1902_v10 = vld [vmem:[#allocation4 + $0x284] ss:$20 sps:$4 sm:$0xff]   ;;  %v1905_v11 = vld [vmem:[#allocation4 + $0x28c] ss:$20 sps:$4 sm:$0xff]   ;;  %v2137_v13 = vshrl.u32 %v61_v12, 7 }
  0x40   :  { %v48_v15 = vld [vmem:[%s2181_s3] ss:$4 sm:$0xf] }
  0x41   :  { %1026 = vmatpush1.bf16.msra.mxu0 %v1828_v27  ;;  %1112 = vmatpush1.bf16.msra.mxu1 %v1831_v30  ;;  %v63_v14 = vsub.s32 0, %v2137_v13  ;;  %v67_v16 = vsub.s32 1, %v2137_v13  ;;  %v71_v18 = vsub.s32 2, %v2137_v13  ;;  %v75_v20 = vsub.s32 3, %v2137_v13  ;;  %v1939_v12 = vld [vmem:[#allocation4 + $0x378] ss:$20 sps:$4 sm:$0xff]  }
  0x42   :  { %1027 = vmatprep.subr.bf16.mxu0 %v1836_v29  ;;  %1113 = vmatprep.subr.bf16.mxu1 %v1839_v32 }
  0x43   :  { %v64_v17 = vrot.slane %v48_v15, %v63_v14  ;;  %v68_v19 = vrot.slane %v48_v15, %v67_v16  ;;  %v72_v24 = vrot.slane %v48_v15, %v71_v18  ;;  %v76_v27 = vrot.slane %v48_v15, %v75_v20  ;;  %v1944_v15 = vld [vmem:[#allocation4 + $0x39c] ss:$20 sps:$4 sm:$0xff]  }
  0x45   :  { %1028 = vmatpush1.bf16.msra.mxu0 %v1834_v31  ;;  %1114 = vmatpush1.bf16.msra.mxu1 %v1837_v34 }
  0x46   :  { %1029 = vmatprep.subr.bf16.mxu0 %v1842_v33  ;;  %1115 = vmatprep.subr.bf16.mxu1 %v1845_v36 }
  0x49   :  { %1030 = vmatpush1.bf16.msra.mxu0 %v1840_v35  ;;  %1116 = vmatpush1.bf16.msra.mxu1 %v1843_v38 }
  0x4a   :  { %1031 = vmatprep.subr.bf16.mxu0 %v1848_v37  ;;  %1117 = vmatprep.subr.bf16.mxu1 %v1851_v40 }
  0x4d   :  { %1032 = vmatpush1.bf16.msra.mxu0 %v1846_v39  ;;  %1118 = vmatpush1.bf16.msra.mxu1 %v1849_v42 }
  0x4e   :  { %1033 = vmatprep.subr.bf16.mxu0 %v1854_v41  ;;  %1119 = vmatprep.subr.bf16.mxu1 %v1857_v44 }
  0x51   :  { %1034 = vmatpush1.bf16.msra.mxu0 %v1852_v43  ;;  %1120 = vmatpush1.bf16.msra.mxu1 %v1855_v46  ;;  %v1903_v46 = vld [vmem:[#allocation4 + $0x288] ss:$20 sps:$4 sm:$0xff]  }
  0x52   :  { %1035 = vmatprep.subr.bf16.mxu0 %v1860_v45  ;;  %1121 = vmatprep.subr.bf16.mxu1 %v1863_v48  ;;  %v1900_v45 = vld [vmem:[#allocation4 + $0x280] ss:$20 sps:$4 sm:$0xff]  }
  0x55   :  { %1036 = vmatpush1.bf16.msra.mxu0 %v1858_v47  ;;  %1122 = vmatpush1.bf16.msra.mxu1 %v1861_v50  ;;  %v1911_v50 = vld [vmem:[#allocation4 + $0x2b4] ss:$20 sps:$4 sm:$0xff]  }
  0x56   :  { %1037 = vmatprep.subr.bf16.mxu0 %v1866_v49  ;;  %1123 = vmatprep.subr.bf16.mxu1 %v1869_v52  ;;  %v1908_v49 = vld [vmem:[#allocation4 + $0x2ac] ss:$20 sps:$4 sm:$0xff]  }
  0x59   :  { %1038 = vmatpush1.bf16.msra.mxu0 %v1864_v51  ;;  %1124 = vmatpush1.bf16.msra.mxu1 %v1867_v54  ;;  %v1906_v54 = vld [vmem:[#allocation4 + $0x2a8] ss:$20 sps:$4 sm:$0xff]  }
  0x5a   :  { %1039 = vmatprep.subr.bf16.mxu0 %v1872_v53  ;;  %1125 = vmatprep.subr.bf16.mxu1 %v1875_v56 }
  0x5d   :  { %1040 = vmatpush1.bf16.msra.mxu0 %v1870_v55  ;;  %1126 = vmatpush1.bf16.msra.mxu1 %v1873_v58  ;;  %v1909_v55 = vld [vmem:[#allocation4 + $0x2b0] ss:$20 sps:$4 sm:$0xff]  }
  0x5e   :  { %1041 = vmatprep.subr.bf16.mxu0 %v1878_v57  ;;  %1127 = vmatprep.subr.bf16.mxu1 %v1881_v60  ;;  %v1914_v57 = vld [vmem:[#allocation4 + $0x2d4] ss:$20 sps:$4 sm:$0xff]   ;;  %v1917_v58 = vld [vmem:[#allocation4 + $0x2dc] ss:$20 sps:$4 sm:$0xff]   ;;  %v1915_v60 = vld [vmem:[#allocation4 + $0x2d8] ss:$20 sps:$4 sm:$0xff]  }
  0x61   :  { %1042 = vmatpush1.bf16.msra.mxu0 %v1876_v59  ;;  %1128 = vmatpush1.bf16.msra.mxu1 %v1879_v62  ;;  %v1912_v59 = vld [vmem:[#allocation4 + $0x2d0] ss:$20 sps:$4 sm:$0xff]  }
  0x62   :  { %1043 = vmatprep.subr.bf16.mxu0 %v1884_v61  ;;  %1129 = vmatprep.subr.bf16.mxu1 %v1887_v0  ;;  %v1920_v61 = vld [vmem:[#allocation4 + $0x2fc] ss:$20 sps:$4 sm:$0xff]   ;;  %v1923_v62 = vld [vmem:[#allocation4 + $0x304] ss:$20 sps:$4 sm:$0xff]   ;;  %v1921_v0 = vld [vmem:[#allocation4 + $0x300] ss:$20 sps:$4 sm:$0xff]  }
  0x65   :  { %1044 = vmatpush1.bf16.msra.mxu0 %v1882_v63  ;;  %1130 = vmatpush1.bf16.msra.mxu1 %v1885_v1  ;;  %v1918_v63 = vld [vmem:[#allocation4 + $0x2f8] ss:$20 sps:$4 sm:$0xff]  }
  0x66   :  { %1045 = vmatprep.subr.bf16.mxu0 %v1890_v2  ;;  %1131 = vmatprep.subr.bf16.mxu1 %v1893_v3  ;;  %v1926_v1 = vld [vmem:[#allocation4 + $0x324] ss:$20 sps:$4 sm:$0xff]   ;;  %v1929_v2 = vld [vmem:[#allocation4 + $0x32c] ss:$20 sps:$4 sm:$0xff]  }
  0x67   :  { %v1924_v3 = vld [vmem:[#allocation4 + $0x320] ss:$20 sps:$4 sm:$0xff]  }
  0x69   :  { %1046 = vmatpush1.bf16.msra.mxu0 %v1888_v4  ;;  %1132 = vmatpush1.bf16.msra.mxu1 %v1891_v5  ;;  %v1927_v4 = vld [vmem:[#allocation4 + $0x328] ss:$20 sps:$4 sm:$0xff]   ;;  %v1932_v5 = vld [vmem:[#allocation4 + $0x34c] ss:$20 sps:$4 sm:$0xff]  }
  0x6a   :  { %1047 = vmatprep.subr.bf16.mxu0 %v1896_v6  ;;  %1133 = vmatprep.subr.bf16.mxu1 %v1899_v7  ;;  %v1935_v6 = vld [vmem:[#allocation4 + $0x354] ss:$20 sps:$4 sm:$0xff]  }
  0x6b   :  { %v1930_v7 = vld [vmem:[#allocation4 + $0x348] ss:$20 sps:$4 sm:$0xff]  }
  0x6d   :  { %1048 = vmatpush1.bf16.msra.mxu0 %v1894_v8  ;;  %1134 = vmatpush1.bf16.msra.mxu1 %v1897_v9  ;;  %v1933_v8 = vld [vmem:[#allocation4 + $0x350] ss:$20 sps:$4 sm:$0xff]   ;;  %v1938_v9 = vld [vmem:[#allocation4 + $0x374] ss:$20 sps:$4 sm:$0xff]  }
  0x6e   :  { %1060 = vmatprep.subr.bf16.mxu0 %v1902_v10  ;;  %1146 = vmatprep.subr.bf16.mxu1 %v1905_v11  ;;  %v1941_v10 = vld [vmem:[#allocation4 + $0x37c] ss:$20 sps:$4 sm:$0xff]  }
  0x6f   :  { %v1936_v11 = vld [vmem:[#allocation4 + $0x370] ss:$20 sps:$4 sm:$0xff]  }
 0x103   :  { %v164_v21 = vpop.f32.mrb[0].mxu0  ;;  %v207_v31 = vpop.f32.mrb[0].mxu1 }
 0x104   :  { %v165_v22 = vadd.f32 %v164_v21, %v64_v17  ;;  %v166_v23 = vpop.f32.mrb[1].mxu0  ;;  %v208_v34 = vadd.f32 %v207_v31, %v72_v24  ;;  %v209_v35 = vpop.f32.mrb[1].mxu1  ;;  %v1945_v21 = vld [vmem:[#allocation4 + $0x3a0] ss:$20 sps:$4 sm:$0xff]   ;;  %v1965_v31 = vld [vmem:[#allocation4 + $0x41c] ss:$20 sps:$4 sm:$0xff]  }
 0x105   :  { %v167_v25 = vadd.f32 %v166_v23, %v68_v19  ;;  %v168_v26 = vpop.f32.mrb[2].mxu0  ;;  %v210_v38 = vadd.f32 %v209_v35, %v76_v27  ;;  %v211_v39 = vpop.f32.mrb[2].mxu1  ;;  %v1953_v23 = vld [vmem:[#allocation4 + $0x3cc] ss:$20 sps:$4 sm:$0xff]   ;;  %v1971_v35 = vld [vmem:[#allocation4 + $0x444] ss:$20 sps:$4 sm:$0xff]  }
 0x106   :  { %v169_v28 = vadd.f32 %v168_v26, %v64_v17  ;;  %v170_v29 = vpop.f32.mrb[3].mxu0  ;;  %v216_v32 = vmax.f32 %v165_v22, 0.0  ;;  %v218_v41 = vmax.f32 %v208_v34, 0.0  ;;  %v212_v42 = vadd.f32 %v211_v39, %v72_v24  ;;  %v213_v43 = vpop.f32.mrb[3].mxu1  ;;  %v1947_v17 = vld [vmem:[#allocation4 + $0x3a4] ss:$20 sps:$4 sm:$0xff]  }
 0x107   :  { %v171_v30 = vadd.f32 %v170_v29, %v68_v19  ;;  %v217_v36 = vmax.f32 %v167_v25, 0.0  ;;  %v219_v47 = vmax.f32 %v210_v38, 0.0  ;;  %v214_v48 = vadd.f32 %v213_v43, %v76_v27  ;;  %v1942_v19 = vld [vmem:[#allocation4 + $0x398] ss:$20 sps:$4 sm:$0xff]   ;;  %v1948_v24 = vld [vmem:[#allocation4 + $0x3c0] ss:$20 sps:$4 sm:$0xff]  }
 0x108   :  { %v220_v33 = vmax.f32 %v169_v28, 0.0  ;;  %v222_v51 = vmax.f32 %v212_v42, 0.0  ;;  %v1950_v22 = vld [vmem:[#allocation4 + $0x3c4] ss:$20 sps:$4 sm:$0xff]   ;;  %v1951_v25 = vld [vmem:[#allocation4 + $0x3c8] ss:$20 sps:$4 sm:$0xff]  }
 0x109   :  { %v221_v37 = vmax.f32 %v171_v30, 0.0  ;;  %v223_v52 = vmax.f32 %v214_v48, 0.0  ;;  %v1956_v26 = vld [vmem:[#allocation4 + $0x3ec] ss:$20 sps:$4 sm:$0xff]   ;;  %v1959_v27 = vld [vmem:[#allocation4 + $0x3f4] ss:$20 sps:$4 sm:$0xff]  }
 0x10a   :  { %v224_v40 = vpack.c.bf16 %v220_v33, %v216_v32  ;;  %v2154_v53 = vpack.c.bf16 %v222_v51, %v218_v41  ;;  %v1954_v28 = vld [vmem:[#allocation4 + $0x3e8] ss:$20 sps:$4 sm:$0xff]   ;;  %v1957_v29 = vld [vmem:[#allocation4 + $0x3f0] ss:$20 sps:$4 sm:$0xff]   ;;  %v1963_v33 = vld [vmem:[#allocation4 + $0x418] ss:$20 sps:$4 sm:$0xff]  }
 0x10b   :  { %v225_v44 = vpack.c.bf16 %v221_v37, %v217_v36  ;;  %v227_v56 = vpack.c.bf16 %v223_v52, %v219_v47  ;;  %v1962_v30 = vld [vmem:[#allocation4 + $0x414] ss:$20 sps:$4 sm:$0xff]   ;;  %v1960_v32 = vld [vmem:[#allocation4 + $0x410] ss:$20 sps:$4 sm:$0xff]   ;;  %v1966_v36 = vld [vmem:[#allocation4 + $0x438] ss:$20 sps:$4 sm:$0xff]  }
 0x10c   :  { %v1968_v34 = vld [vmem:[#allocation4 + $0x43c] ss:$20 sps:$4 sm:$0xff]   ;;  %v1969_v37 = vld [vmem:[#allocation4 + $0x440] ss:$20 sps:$4 sm:$0xff]   ;;  %v1974_v38 = vld [vmem:[#allocation4 + $0x464] ss:$20 sps:$4 sm:$0xff]  }
 0x10d   :  { %1049 = vmatprep.mubr.bf16.mxu0 %v225_v44  ;;  %1135 = vmatprep.mubr.bf16.mxu1 %v225_v44  ;;  %v1977_v39 = vld [vmem:[#allocation4 + $0x46c] ss:$20 sps:$4 sm:$0xff]   ;;  %v1975_v41 = vld [vmem:[#allocation4 + $0x468] ss:$20 sps:$4 sm:$0xff]   ;;  %v1984_v48 = vld [vmem:[#allocation4 + $0x4b0] ss:$20 sps:$4 sm:$0xff]  }
 0x10e   :  { %1050 = vmatmul.mubr.bf16.vlgmr.msra.gmra.mrb[4].mxu0 %v224_v40  ;;  %1136 = vmatmul.mubr.bf16.vlgmr.msra.gmra.mrb[4].mxu1 %v224_v40  ;;  %v1972_v40 = vld [vmem:[#allocation4 + $0x460] ss:$20 sps:$4 sm:$0xff]   ;;  %v1978_v44 = vld [vmem:[#allocation4 + $0x488] ss:$20 sps:$4 sm:$0xff]   ;;  %v1995_v51 = vld [vmem:[#allocation4 + $0x4e4] ss:$20 sps:$4 sm:$0xff]  }
 0x10f   :  { %1061 = vmatpush1.bf16.msra.mxu0 %v1900_v45  ;;  %1147 = vmatpush1.bf16.msra.mxu1 %v1903_v46  ;;  %v1980_v42 = vld [vmem:[#allocation4 + $0x48c] ss:$20 sps:$4 sm:$0xff]   ;;  %v1983_v43 = vld [vmem:[#allocation4 + $0x494] ss:$20 sps:$4 sm:$0xff]   ;;  %v1981_v45 = vld [vmem:[#allocation4 + $0x490] ss:$20 sps:$4 sm:$0xff]  }
 0x110   :  { %1062 = vmatprep.subr.bf16.mxu0 %v1908_v49  ;;  %1148 = vmatprep.subr.bf16.mxu1 %v1911_v50  ;;  %v1986_v46 = vld [vmem:[#allocation4 + $0x4b4] ss:$20 sps:$4 sm:$0xff]   ;;  %v1989_v47 = vld [vmem:[#allocation4 + $0x4bc] ss:$20 sps:$4 sm:$0xff]   ;;  %v1987_v49 = vld [vmem:[#allocation4 + $0x4b8] ss:$20 sps:$4 sm:$0xff]  }
 0x111   :  { %1092 = vmatprep.mubr.bf16.mxu0 %v227_v56  ;;  %1178 = vmatprep.mubr.bf16.mxu1 %v227_v56  ;;  %v1992_v50 = vld [vmem:[#allocation4 + $0x4dc] ss:$20 sps:$4 sm:$0xff]   ;;  %v1990_v52 = vld [vmem:[#allocation4 + $0x4d8] ss:$20 sps:$4 sm:$0xff]  }
 0x112   :  { %v1997_v56 = vld [vmem:[#allocation4 + $0x3d0] ss:$20 sps:$4 sm:$0xff]  }
 0x113   :  { %1063 = vmatpush1.bf16.msra.mxu0 %v1906_v54  ;;  %1149 = vmatpush1.bf16.msra.mxu1 %v1909_v55  ;;  %v1993_v54 = vld [vmem:[#allocation4 + $0x4e0] ss:$20 sps:$4 sm:$0xff]   ;;  %v1996_v55 = vld [vmem:[#allocation4 + $0x150] ss:$20 sps:$4 sm:$0xff]  }
 0x114   :  { %1064 = vmatprep.subr.bf16.mxu0 %v1914_v57  ;;  %1150 = vmatprep.subr.bf16.mxu1 %v1917_v58  ;;  %v1998_v57 = vld [vmem:[#allocation4 + $0x10] ss:$20 sps:$4 sm:$0xff]  }
 0x115   :  { %v1999_v58 = vld [vmem:[#allocation4 + $0x290] ss:$20 sps:$4 sm:$0xff]  }
 0x117   :  { %1065 = vmatpush1.bf16.msra.mxu0 %v1912_v59  ;;  %1151 = vmatpush1.bf16.msra.mxu1 %v1915_v60  ;;  %v2000_v59 = vld [vmem:[#allocation4 + $0x178] ss:$20 sps:$4 sm:$0xff]  }
 0x118   :  { %1066 = vmatprep.subr.bf16.mxu0 %v1920_v61  ;;  %1152 = vmatprep.subr.bf16.mxu1 %v1923_v62  ;;  %v2001_v60 = vld [vmem:[#allocation4 + $0x3f8] ss:$20 sps:$4 sm:$0xff]  }
 0x119   :  { %v2002_v61 = vld [vmem:[#allocation4 + $0x38] ss:$20 sps:$4 sm:$0xff]  }
 0x11a   :  { %v2003_v62 = vld [vmem:[#allocation4 + $0x2b8] ss:$20 sps:$4 sm:$0xff]  }
 0x11b   :  { %1067 = vmatpush1.bf16.msra.mxu0 %v1918_v63  ;;  %1153 = vmatpush1.bf16.msra.mxu1 %v1921_v0  ;;  %v2004_v63 = vld [vmem:[#allocation4 + $0x1a0] ss:$20 sps:$4 sm:$0xff]  }
 0x11c   :  { %1068 = vmatprep.subr.bf16.mxu0 %v1926_v1  ;;  %1154 = vmatprep.subr.bf16.mxu1 %v1929_v2  ;;  %v2005_v0 = vld [vmem:[#allocation4 + $0x420] ss:$20 sps:$4 sm:$0xff]  }
 0x11d   :  { %v2006_v1 = vld [vmem:[#allocation4 + $0x60] ss:$20 sps:$4 sm:$0xff]  }
 0x11e   :  { %v2007_v2 = vld [vmem:[#allocation4 + $0x2e0] ss:$20 sps:$4 sm:$0xff]  }
 0x11f   :  { %1069 = vmatpush1.bf16.msra.mxu0 %v1924_v3  ;;  %1155 = vmatpush1.bf16.msra.mxu1 %v1927_v4  ;;  %v2008_v3 = vld [vmem:[#allocation4 + $0x1c8] ss:$20 sps:$4 sm:$0xff]  }
 0x120   :  { %1070 = vmatprep.subr.bf16.mxu0 %v1932_v5  ;;  %1156 = vmatprep.subr.bf16.mxu1 %v1935_v6  ;;  %v2009_v4 = vld [vmem:[#allocation4 + $0x448] ss:$20 sps:$4 sm:$0xff]   ;;  %v2012_v6 = vld [vmem:[#allocation4 + $0x1f0] ss:$20 sps:$4 sm:$0xff]  }
 0x121   :  { %v2010_v5 = vld [vmem:[#allocation4 + $0x88] ss:$20 sps:$4 sm:$0xff]  }
 0x123   :  { %1071 = vmatpush1.bf16.msra.mxu0 %v1930_v7  ;;  %1157 = vmatpush1.bf16.msra.mxu1 %v1933_v8  ;;  %v2013_v7 = vld [vmem:[#allocation4 + $0x470] ss:$20 sps:$4 sm:$0xff]  }
 0x124   :  { %1072 = vmatprep.subr.bf16.mxu0 %v1938_v9  ;;  %1158 = vmatprep.subr.bf16.mxu1 %v1941_v10  ;;  %v2014_v8 = vld [vmem:[#allocation4 + $0xb0] ss:$20 sps:$4 sm:$0xff]   ;;  %v2016_v10 = vld [vmem:[#allocation4 + $0x218] ss:$20 sps:$4 sm:$0xff]  }
 0x125   :  { %v2015_v9 = vld [vmem:[#allocation4 + $0x330] ss:$20 sps:$4 sm:$0xff]  }
 0x127   :  { %1073 = vmatpush1.bf16.msra.mxu0 %v1936_v11  ;;  %1159 = vmatpush1.bf16.msra.mxu1 %v1939_v12  ;;  %v2017_v11 = vld [vmem:[#allocation4 + $0x498] ss:$20 sps:$4 sm:$0xff]  }
 0x128   :  { %1074 = vmatprep.subr.bf16.mxu0 %v1944_v15  ;;  %1160 = vmatprep.subr.bf16.mxu1 %v1947_v17  ;;  %v2018_v12 = vld [vmem:[#allocation4 + $0xd8] ss:$20 sps:$4 sm:$0xff]   ;;  %v2020_v17 = vld [vmem:[#allocation4 + $0x240] ss:$20 sps:$4 sm:$0xff]  }
 0x129   :  { %v2019_v15 = vld [vmem:[#allocation4 + $0x358] ss:$20 sps:$4 sm:$0xff]  }
 0x12b   :  { %1075 = vmatpush1.bf16.msra.mxu0 %v1942_v19  ;;  %1161 = vmatpush1.bf16.msra.mxu1 %v1945_v21  ;;  %v2021_v19 = vld [vmem:[#allocation4 + $0x4c0] ss:$20 sps:$4 sm:$0xff]  }
 0x12c   :  { %1076 = vmatprep.subr.bf16.mxu0 %v1950_v22  ;;  %1162 = vmatprep.subr.bf16.mxu1 %v1953_v23  ;;  %v2022_v21 = vld [vmem:[#allocation4 + $0x100] ss:$20 sps:$4 sm:$0xff]   ;;  %v2024_v23 = vld [vmem:[#allocation4 + $0x268] ss:$20 sps:$4 sm:$0xff]  }
 0x12d   :  { %v2023_v22 = vld [vmem:[#allocation4 + $0x380] ss:$20 sps:$4 sm:$0xff]  }
 0x12f   :  { %1077 = vmatpush1.bf16.msra.mxu0 %v1948_v24  ;;  %1163 = vmatpush1.bf16.msra.mxu1 %v1951_v25  ;;  %v2025_v24 = vld [vmem:[#allocation4 + $0x4e8] ss:$20 sps:$4 sm:$0xff]  }
 0x130   :  { %1078 = vmatprep.subr.bf16.mxu0 %v1956_v26  ;;  %1164 = vmatprep.subr.bf16.mxu1 %v1959_v27  ;;  %v2026_v25 = vld [vmem:[#allocation4 + $0x128] ss:$20 sps:$4 sm:$0xff]  }
 0x131   :  { %v2027_v26 = vld [vmem:[#allocation4 + $0x3a8] ss:$20 sps:$4 sm:$0xff]  }
 0x132   :  { %v1551_v27 = vld [vmem:[%s2181_s3 + $0x1] ss:$4 sm:$0xf] }
 0x133   :  { %1079 = vmatpush1.bf16.msra.mxu0 %v1954_v28  ;;  %1165 = vmatpush1.bf16.msra.mxu1 %v1957_v29  ;;  %v360_v28 = vrot.slane %v1551_v27, %v63_v14  ;;  %v368_v29 = vrot.slane %v1551_v27, %v71_v18 }
 0x134   :  { %1080 = vmatprep.subr.bf16.mxu0 %v1962_v30  ;;  %1166 = vmatprep.subr.bf16.mxu1 %v1965_v31  ;;  %v364_v30 = vrot.slane %v1551_v27, %v67_v16  ;;  %v372_v31 = vrot.slane %v1551_v27, %v75_v20 }
 0x137   :  { %1081 = vmatpush1.bf16.msra.mxu0 %v1960_v32  ;;  %1167 = vmatpush1.bf16.msra.mxu1 %v1963_v33 }
 0x138   :  { %1082 = vmatprep.subr.bf16.mxu0 %v1968_v34  ;;  %1168 = vmatprep.subr.bf16.mxu1 %v1971_v35 }
 0x13b   :  { %1083 = vmatpush1.bf16.msra.mxu0 %v1966_v36  ;;  %1169 = vmatpush1.bf16.msra.mxu1 %v1969_v37 }
 0x13c   :  { %1084 = vmatprep.subr.bf16.mxu0 %v1974_v38  ;;  %1170 = vmatprep.subr.bf16.mxu1 %v1977_v39 }
 0x13f   :  { %1085 = vmatpush1.bf16.msra.mxu0 %v1972_v40  ;;  %1171 = vmatpush1.bf16.msra.mxu1 %v1975_v41 }
 0x140   :  { %1086 = vmatprep.subr.bf16.mxu0 %v1980_v42  ;;  %1172 = vmatprep.subr.bf16.mxu1 %v1983_v43 }
 0x143   :  { %1087 = vmatpush1.bf16.msra.mxu0 %v1978_v44  ;;  %1173 = vmatpush1.bf16.msra.mxu1 %v1981_v45 }
 0x144   :  { %1088 = vmatprep.subr.bf16.mxu0 %v1986_v46  ;;  %1174 = vmatprep.subr.bf16.mxu1 %v1989_v47 }
 0x147   :  { %1089 = vmatpush1.bf16.msra.mxu0 %v1984_v48  ;;  %1175 = vmatpush1.bf16.msra.mxu1 %v1987_v49 }
 0x148   :  { %1090 = vmatprep.subr.bf16.mxu0 %v1992_v50  ;;  %1176 = vmatprep.subr.bf16.mxu1 %v1995_v51 }
 0x14b   :  { %1091 = vmatpush1.bf16.msra.mxu0 %v1990_v52  ;;  %1177 = vmatpush1.bf16.msra.mxu1 %v1993_v54 }
 0x14c   :  { %1724 = vmatprep.subr.bf16.mxu0 %v1996_v55  ;;  %1746 = vmatprep.subr.bf16.mxu1 %v1997_v56 }
 0x14e   :  { %1093 = vmatmul.mubr.bf16.vlgmr.msra.gmra.mrb[4].mxu0 %v2154_v53  ;;  %1179 = vmatmul.mubr.bf16.vlgmr.msra.gmra.mrb[4].mxu1 %v2154_v53  ;;  %v2011_v53 = vld [vmem:[#allocation4 + $0x308] ss:$20 sps:$4 sm:$0xff]  }
 0x14f   :  { %1725 = vmatpush3.bf16.msra.mxu0 %v1998_v57  ;;  %1747 = vmatpush3.bf16.msra.mxu1 %v1999_v58  ;;  %v1691_v58 = vld [vmem:[%s2181_s3 + $0x2] ss:$0 sm:$0xff] }
 0x150   :  { %1726 = vmatprep.subr.bf16.mxu0 %v2000_v59  ;;  %1748 = vmatprep.subr.bf16.mxu1 %v2001_v60 }
 0x153   :  { %1727 = vmatpush3.bf16.msra.mxu0 %v2002_v61  ;;  %1749 = vmatpush3.bf16.msra.mxu1 %v2003_v62 }
 0x154   :  { %1728 = vmatprep.subr.bf16.mxu0 %v2004_v63  ;;  %1750 = vmatprep.subr.bf16.mxu1 %v2005_v0 }
 0x157   :  { %1729 = vmatpush3.bf16.msra.mxu0 %v2006_v1  ;;  %1751 = vmatpush3.bf16.msra.mxu1 %v2007_v2 }
 0x158   :  { %1730 = vmatprep.subr.bf16.mxu0 %v2008_v3  ;;  %1752 = vmatprep.subr.bf16.mxu1 %v2009_v4 }
 0x15b   :  { %1731 = vmatpush3.bf16.msra.mxu0 %v2010_v5  ;;  %1753 = vmatpush3.bf16.msra.mxu1 %v2011_v53 }
 0x15c   :  { %1732 = vmatprep.subr.bf16.mxu0 %v2012_v6  ;;  %1754 = vmatprep.subr.bf16.mxu1 %v2013_v7 }
 0x15f   :  { %1733 = vmatpush3.bf16.msra.mxu0 %v2014_v8  ;;  %1755 = vmatpush3.bf16.msra.mxu1 %v2015_v9 }
 0x160   :  { %1734 = vmatprep.subr.bf16.mxu0 %v2016_v10  ;;  %1756 = vmatprep.subr.bf16.mxu1 %v2017_v11 }
 0x163   :  { %1735 = vmatpush3.bf16.msra.mxu0 %v2018_v12  ;;  %1757 = vmatpush3.bf16.msra.mxu1 %v2019_v15 }
 0x164   :  { %1736 = vmatprep.subr.bf16.mxu0 %v2020_v17  ;;  %1758 = vmatprep.subr.bf16.mxu1 %v2021_v19 }
 0x167   :  { %1737 = vmatpush3.bf16.msra.mxu0 %v2022_v21  ;;  %1759 = vmatpush3.bf16.msra.mxu1 %v2023_v22 }
 0x168   :  { %1738 = vmatprep.subr.bf16.mxu0 %v2024_v23  ;;  %1760 = vmatprep.subr.bf16.mxu1 %v2025_v24 }
 0x16b   :  { %1739 = vmatpush3.bf16.msra.mxu0 %v2026_v25  ;;  %1761 = vmatpush3.bf16.msra.mxu1 %v2027_v26 }
 0x221   :  { %v1094_v32 = vpop.f32.mrb[4].mxu0  ;;  %v1180_v33 = vpop.f32.mrb[4].mxu1 }
 0x222   :  { %v1768_v34 = vadd.f32 %v1094_v32, %v360_v28  ;;  %v1772_v35 = vadd.f32 %v1180_v33, %v368_v29  ;;  %v1096_v36 = vpop.f32.mrb[5].mxu0  ;;  %v1182_v37 = vpop.f32.mrb[5].mxu1 }
 0x223   :  { %v1769_v38 = vadd.f32 %v1096_v36, %v364_v30  ;;  %v1773_v39 = vadd.f32 %v1182_v37, %v372_v31  ;;  %v1098_v40 = vpop.f32.mrb[6].mxu0  ;;  %v1184_v41 = vpop.f32.mrb[6].mxu1 }
 0x224   :  { %v1770_v14 = vadd.f32 %v1098_v40, %v360_v28  ;;  %v1774_v42 = vadd.f32 %v1184_v41, %v368_v29  ;;  %v1100_v43 = vpop.f32.mrb[7].mxu0  ;;  %v1186_v18 = vpop.f32.mrb[7].mxu1  ;;  %v1189_v16 = vmax.f32 %v1768_v34, 0.0  ;;  %v1191_v46 = vmax.f32 %v1772_v35, 0.0 }
 0x225   :  { %v1771_v44 = vadd.f32 %v1100_v43, %v364_v30  ;;  %v1775_v45 = vadd.f32 %v1186_v18, %v372_v31  ;;  %v1190_v47 = vmax.f32 %v1769_v38, 0.0  ;;  %v1192_v48 = vmax.f32 %v1773_v39, 0.0 }
 0x226   :  { %v1193_v13 = vmax.f32 %v1770_v14, 0.0  ;;  %v1195_v20 = vmax.f32 %v1774_v42, 0.0 }
 0x227   :  { %v1194_v49 = vmax.f32 %v1771_v44, 0.0  ;;  %v1196_v50 = vmax.f32 %v1775_v45, 0.0 }
 0x228   :  { %v1197_v51 = vpack.c.bf16 %v1193_v13, %v1189_v16  ;;  %v1199_v52 = vpack.c.bf16 %v1195_v20, %v1191_v46 }
 0x229   :  { %v1198_v54 = vpack.c.bf16 %v1194_v49, %v1190_v47  ;;  %v1200_v55 = vpack.c.bf16 %v1196_v50, %v1192_v48 }
 0x22b   :  { %1493 = vmatprep.mubr.bf16.mxu0 %v1198_v54  ;;  %1534 = vmatprep.mubr.bf16.mxu1 %v1200_v55 }
 0x22c   :  { %1494 = vmatmul.mubr.bf16.vlgmr.msra.gmra.mrb[8].mxu0 %v1197_v51  ;;  %1535 = vmatmul.mubr.bf16.vlgmr.msra.gmra.mrb[8].mxu1 %v1199_v52 }
 0x2ff   :  { %v1740_v56 = vpop.f32.mrb[8].mxu0  ;;  %v1762_v57 = vpop.f32.mrb[8].mxu1 }
 0x300   :  { %v1741_v59 = vpop.f32.mrb[9].mxu0  ;;  %v1763_v60 = vpop.f32.mrb[9].mxu1 }
 0x301   :  { %v1742_v61 = vadd.f32 %v1741_v59, %v1740_v56  ;;  %v1764_v62 = vadd.f32 %v1763_v60, %v1762_v57  ;;  %v1743_v63 = vpop.f32.mrb[10].mxu0  ;;  %v1765_v0 = vpop.f32.mrb[10].mxu1 }
 0x302   :  { %v1744_v1 = vpop.f32.mrb[11].mxu0  ;;  %v1766_v2 = vpop.f32.mrb[11].mxu1 }
 0x303   :  { %v1496_v3 = vadd.f32 %v1742_v61, %v1691_v58  ;;  %v1745_v4 = vadd.f32 %v1744_v1, %v1743_v63  ;;  %v1767_v5 = vadd.f32 %v1766_v2, %v1765_v0 }
 0x305   :  { %v1537_v53 = vadd.f32 %v1764_v62, %v1496_v3  ;;  %v1499_v6 = vadd.f32 %v1745_v4, %v1691_v58 }
 0x307   :  { %1543 = vst [vmem:[%s2182_s4] sm:$0xff] %v1537_v53  ;;  %v1540_v7 = vadd.f32 %v1767_v5, %v1499_v6 }
 0x309   :  { %1544 = vst [vmem:[%s2182_s4 + $0x8] sm:$0xff] %v1540_v7 }
 0x30a   :  { %1549 = vsyncpa [#allocation3], 1 }
 0x30b   :  { %1550 = vsyncpa [#allocation5], 1 }

</bundles_post_ra>
